<compile_context>
chip_gen: v7x
topology: tpu7x:2x2x1
jax: 0.10.0
libtpu: 0.0.40
codegen_flags: <defaults>
</compile_context>

<pallas_src>
import jax
import jax.numpy as jnp
from jax.experimental import pallas as pl
from jax.experimental.pallas import tpu as pltpu

EPS = 1e-5
LANE = 128
_MIB = 1024 * 1024


def _round_up(v, m):
    return ((v + m - 1) // m) * m


def _sublane(dtype):
    # Sublane packing: 8 rows for 4-byte, 16 for 2-byte, 32 for 1-byte dtypes.
    return {4: 8, 2: 16, 1: 32}.get(jnp.dtype(dtype).itemsize, 8)


def _vmem_capacity_bytes():
    try:
        return int(pltpu.get_tpu_info().vmem_capacity_bytes)
    except Exception:
        return 64 * _MIB            # conservative fallback (v7x-sized VMEM)


# --------------------------------------------------------------------------
# Fast path: whole (folded) array resident in VMEM -> one fused kernel.
# --------------------------------------------------------------------------
def _make_fused_kernel(k_fold, c, inv_n):
    def kernel(x_ref, gamma_ref, beta_ref, o_ref):
        x = x_ref[...].astype(jnp.float32)                     # [R, W]

        def fold(v):  # combine the k row-fold replicas per channel (lane rolls)
            tot = v
            for f in range(1, k_fold):
                tot = tot + pltpu.roll(v, shift=f * c, axis=1)
            return tot

        mean = fold(jnp.sum(x, axis=0, keepdims=True)) * inv_n      # [1, W]
        xc = x - mean
        var = jnp.maximum(fold(jnp.sum(xc * xc, axis=0, keepdims=True)) * inv_n,
                          0.0)
        scale = gamma_ref[...].astype(jnp.float32) * jax.lax.rsqrt(var + EPS)
        o_ref[...] = (xc * scale + beta_ref[...].astype(jnp.float32)).astype(o_ref.dtype)

    return kernel


# --------------------------------------------------------------------------
# Two-pass streaming path.
# --------------------------------------------------------------------------
def _make_stats_kernel(tm):
    """Pass 1: masked per-lane sum / sum(x^2) partials, one row per core-split."""
    def kernel(n_ref, x_ref, sum_ref, sumsq_ref):
        s = pl.program_id(0)                 # core-split slot ("parallel")
        j = pl.program_id(1)                 # row-tile within slot ("arbitrary")
        tiles_per = pl.num_programs(1)

        @pl.when(j == 0)
        def _init():
            sum_ref[...] = jnp.zeros_like(sum_ref)
            sumsq_ref[...] = jnp.zeros_like(sumsq_ref)

        start = (s * tiles_per + j) * tm
        row_ids = jax.lax.broadcasted_iota(jnp.int32, x_ref.shape, 0) + start
        x = jnp.where(row_ids < n_ref[0], x_ref[...].astype(jnp.float32), 0.0)
        sum_ref[...] += jnp.sum(x, axis=0, keepdims=True)
        sumsq_ref[...] += jnp.sum(x * x, axis=0, keepdims=True)

    return kernel


def _normalize_kernel(x_ref, scale_ref, shift_ref, o_ref):
    """Pass 2: fused per-element multiply-add y = x * scale + shift."""
    x = x_ref[...].astype(jnp.float32)
    o_ref[...] = (x * scale_ref[...] + shift_ref[...]).astype(o_ref.dtype)


# --------------------------------------------------------------------------
# Wrapper
# --------------------------------------------------------------------------
def batch_norm1d_node(x, gamma, beta, *, force_two_pass=False, row_tile=None):
    """BatchNorm1d (training-mode batch stats) over node features x [N, C]."""
    n, c = x.shape
    orig_shape = x.shape
    dtype = x.dtype
    itemsize = jnp.dtype(dtype).itemsize
    sub = _sublane(dtype)

    # ---- lane-dense view: never pad channels ------------------------------
    if c % LANE != 0 and (LANE % c == 0) and (n % (LANE // c) == 0):
        k_fold = LANE // c                 # fold k rows into the lane dim
        w = LANE
        xv = x.reshape(n // k_fold, LANE)  # contiguous merge -> free reshape
    else:
        k_fold = 1
        w = c                              # last block dim = full array dim
        xv = x
    rows = xv.shape[0]
    inv_n = 1.0 / float(n)

    gamma_w = jnp.tile(gamma.astype(jnp.float32).reshape(1, c), (1, k_fold))
    beta_w = jnp.tile(beta.astype(jnp.float32).reshape(1, c), (1, k_fold))

    cap = _vmem_capacity_bytes()
    vmem_limit = 64 * _MIB if cap >= 128 * _MIB else 32 * _MIB

    # ---- fast path: whole array in VMEM, single read of x -----------------
    f32_bytes = rows * w * 4
    if (not force_two_pass) and f32_bytes <= vmem_limit // 5:
        y = pl.pallas_call(
            _make_fused_kernel(k_fold, c, inv_n),
            out_shape=jax.ShapeDtypeStruct((rows, w), dtype),
            grid=(1,),
            in_specs=[pl.BlockSpec((rows, w), lambda i: (0, 0)),
                      pl.BlockSpec((1, w), lambda i: (0, 0)),
                      pl.BlockSpec((1, w), lambda i: (0, 0))],
            out_specs=pl.BlockSpec((rows, w), lambda i: (0, 0)),
            compiler_params=pltpu.CompilerParams(
                dimension_semantics=("arbitrary",),
                vmem_limit_bytes=vmem_limit),
        )(xv, gamma_w, beta_w)
        return y.reshape(orig_shape)

    # ---- two-pass streaming path -------------------------------------------
    def pick_tm(target_tile_bytes):
        t = max(sub, (target_tile_bytes // (w * itemsize)) // sub * sub)
        return int(min(t, _round_up(rows, sub)))

    # Pass 1 only streams the input (bigger tile); pass 2 double-buffers both
    # input and output tiles (smaller tile).  Both stay well inside the scoped
    # VMEM limit on every generation.
    tm1 = row_tile if row_tile is not None else pick_tm(4 * _MIB)
    tm2 = row_tile if row_tile is not None else pick_tm(2 * _MIB)

    n_tiles1 = pl.cdiv(rows, tm1)
    split = 2 if n_tiles1 >= 2 else 1        # v7x: shard stats over both TCs
    tiles_per = pl.cdiv(n_tiles1, split)
    last_blk = n_tiles1 - 1

    n_arr = jnp.array([rows], jnp.int32)     # true row count (scalar prefetch)

    def x_map(s, j, n_ref):
        # Clamp fully-OOB slots to the last valid block; their rows are masked.
        return (jnp.minimum(s * tiles_per + j, last_blk), 0)

    def out_map(s, j, n_ref):
        return (s, 0)

    psum, psumsq = pl.pallas_call(
        _make_stats_kernel(tm1),
        out_shape=(jax.ShapeDtypeStruct((split, w), jnp.float32),
                   jax.ShapeDtypeStruct((split, w), jnp.float32)),
        grid_spec=pltpu.PrefetchScalarGridSpec(
            num_scalar_prefetch=1,
            grid=(split, tiles_per),
            in_specs=[pl.BlockSpec((tm1, w), x_map)],
            out_specs=[pl.BlockSpec((1, w), out_map),
                       pl.BlockSpec((1, w), out_map)]),
        compiler_params=pltpu.CompilerParams(
            dimension_semantics=("parallel", "arbitrary"),
            vmem_limit_bytes=vmem_limit),
    )(n_arr, xv)

    # Finalize statistics on tiny [split, W] arrays in plain JAX (negligible).
    tot = jnp.sum(psum, axis=0).reshape(k_fold, c).sum(axis=0)        # [C]
    tot2 = jnp.sum(psumsq, axis=0).reshape(k_fold, c).sum(axis=0)     # [C]
    mean = tot * inv_n
    var = jnp.maximum(tot2 * inv_n - mean * mean, 0.0)
    scale_c = gamma.astype(jnp.float32) * jax.lax.rsqrt(var + EPS)
    shift_c = beta.astype(jnp.float32) - mean * scale_c
    scale_w = jnp.tile(scale_c.reshape(1, c), (1, k_fold))
    shift_w = jnp.tile(shift_c.reshape(1, c), (1, k_fold))

    n_tiles2 = pl.cdiv(rows, tm2)
    y = pl.pallas_call(
        _normalize_kernel,
        out_shape=jax.ShapeDtypeStruct((rows, w), dtype),
        grid_spec=pltpu.PrefetchScalarGridSpec(
            num_scalar_prefetch=0,
            grid=(n_tiles2,),
            in_specs=[pl.BlockSpec((tm2, w), lambda i: (i, 0)),
                      pl.BlockSpec((1, w), lambda i: (0, 0)),
                      pl.BlockSpec((1, w), lambda i: (0, 0))],
            out_specs=pl.BlockSpec((tm2, w), lambda i: (i, 0))),
        compiler_params=pltpu.CompilerParams(
            dimension_semantics=("parallel",),
            vmem_limit_bytes=vmem_limit),
    )(xv, scale_w, shift_w)

    return y.reshape(orig_shape)


def reference_bn1d(x, gamma, beta):
    x32 = x.astype(jnp.float32)
    mean = jnp.mean(x32, axis=0, keepdims=True)
    var = jnp.mean((x32 - mean) ** 2, axis=0, keepdims=True)
    return ((x32 - mean) * jax.lax.rsqrt(var + EPS) * gamma[None, :]
            + beta[None, :]).astype(x.dtype)


if __name__ == "__main__":
    key = jax.random.PRNGKey(0)
    num_nodes, channels = 64, 32            # small graph: 64 nodes, 32 channels
    kx, kg, kb = jax.random.split(key, 3)

    x = jax.random.normal(kx, (num_nodes, channels), dtype=jnp.float32)
    # torch.nn.BatchNorm1d default init: weight (gamma) = 1, bias (beta) = 0.
    gamma = jnp.ones((channels,), dtype=jnp.float32)
    beta = jnp.zeros((channels,), dtype=jnp.float32)

    out = jax.block_until_ready(batch_norm1d_node(x, gamma, beta))
    ref = reference_bn1d(x, gamma, beta)
    assert out.shape == x.shape
    assert jnp.allclose(out, ref, atol=1e-4, rtol=1e-4), "fast-path mismatch"

    # Non-trivial affine + non-zero-mean features (exercise scale/shift path).
    gamma2 = 1.0 + 0.1 * jax.random.normal(kg, (channels,), dtype=jnp.float32)
    beta2 = 0.1 * jax.random.normal(kb, (channels,), dtype=jnp.float32)
    x2 = 3.0 + 0.5 * x
    out2 = jax.block_until_ready(batch_norm1d_node(x2, gamma2, beta2))
    assert jnp.allclose(out2, reference_bn1d(x2, gamma2, beta2),
                        atol=1e-4, rtol=1e-4), "affine mismatch"

    # Streaming two-pass path: lane-folded view, ragged row tail, core split.
    x3 = jax.random.normal(kx, (200, channels), dtype=jnp.float32)
    out3 = jax.block_until_ready(
        batch_norm1d_node(x3, gamma2, beta2, force_two_pass=True, row_tile=16))
    assert jnp.allclose(out3, reference_bn1d(x3, gamma2, beta2),
                        atol=1e-4, rtol=1e-4), "two-pass (folded) mismatch"

    # Non-fold path (C not a divisor of 128), ragged rows, both code paths.
    c4 = 48
    x4 = jax.random.normal(kb, (37, c4), dtype=jnp.float32)
    g4 = jnp.ones((c4,), jnp.float32)
    b4 = jnp.zeros((c4,), jnp.float32)
    out4 = jax.block_until_ready(batch_norm1d_node(x4, g4, b4))
    assert jnp.allclose(out4, reference_bn1d(x4, g4, b4),
                        atol=1e-4, rtol=1e-4), "narrow-lane fast-path mismatch"
    out5 = jax.block_until_ready(
        batch_norm1d_node(x4, g4, b4, force_two_pass=True, row_tile=16))
    assert jnp.allclose(out5, reference_bn1d(x4, g4, b4),
                        atol=1e-4, rtol=1e-4), "narrow-lane two-pass mismatch"

    print("KERNEL_OK")
</pallas_src>

<mosaic_0001>
module attributes {stable_mosaic.version = 11 : i64} {
  func.func @kernel(%arg0: i32, %arg1: memref<16x128xf32, #tpu.memory_space<vmem>>, %arg2: memref<1x128xf32, #tpu.memory_space<vmem>>, %arg3: memref<1x128xf32, #tpu.memory_space<vmem>>, %arg4: memref<16x128xf32, #tpu.memory_space<vmem>>) attributes {dimension_semantics = [#tpu.dimension_semantics<arbitrary>], iteration_bounds = array<i64: 1>, scalar_prefetch = 0 : i64, scratch_operands = 0 : i64, tpu.core_type = #tpu.core_type<tc>, window_params = [{pipeline_mode = #tpu.pipeline_mode<synchronous>, transform_indices = @transform_0, window_bounds = array<i64: 16, 128>}, {pipeline_mode = #tpu.pipeline_mode<synchronous>, transform_indices = @transform_1, window_bounds = array<i64: 1, 128>}, {pipeline_mode = #tpu.pipeline_mode<synchronous>, transform_indices = @transform_2, window_bounds = array<i64: 1, 128>}, {pipeline_mode = #tpu.pipeline_mode<synchronous>, transform_indices = @transform_3, window_bounds = array<i64: 16, 128>}]} {
    %c0 = arith.constant 0 : index
    %c0_0 = arith.constant 0 : index
    %0 = vector.load %arg1[%c0, %c0_0] : memref<16x128xf32, #tpu.memory_space<vmem>>, vector<16x128xf32>
    %cst = arith.constant dense<0.000000e+00> : vector<128xf32>
    %1 = vector.multi_reduction <add>, %0, %cst [0] : vector<16x128xf32> to vector<128xf32>
    %2 = vector.shape_cast %1 : vector<128xf32> to vector<1x128xf32>
    %c32_i32 = arith.constant 32 : i32
    %3 = tpu.dynamic_rotate %2 by %c32_i32 dim 1 : vector<1x128xf32>, i32 -> vector<1x128xf32>
    %4 = arith.addf %2, %3 : vector<1x128xf32>
    %c64_i32 = arith.constant 64 : i32
    %5 = tpu.dynamic_rotate %2 by %c64_i32 dim 1 : vector<1x128xf32>, i32 -> vector<1x128xf32>
    %6 = arith.addf %4, %5 : vector<1x128xf32>
    %c96_i32 = arith.constant 96 : i32
    %7 = tpu.dynamic_rotate %2 by %c96_i32 dim 1 : vector<1x128xf32>, i32 -> vector<1x128xf32>
    %8 = arith.addf %6, %7 : vector<1x128xf32>
    %cst_1 = arith.constant 1.562500e-02 : f32
    %9 = vector.broadcast %cst_1 : f32 to vector<1x128xf32>
    %10 = arith.mulf %8, %9 : vector<1x128xf32>
    %11 = vector.broadcast %10 : vector<1x128xf32> to vector<16x128xf32>
    %12 = arith.subf %0, %11 : vector<16x128xf32>
    %13 = arith.mulf %12, %12 : vector<16x128xf32>
    %cst_2 = arith.constant dense<0.000000e+00> : vector<128xf32>
    %14 = vector.multi_reduction <add>, %13, %cst_2 [0] : vector<16x128xf32> to vector<128xf32>
    %15 = vector.shape_cast %14 : vector<128xf32> to vector<1x128xf32>
    %c32_i32_3 = arith.constant 32 : i32
    %16 = tpu.dynamic_rotate %15 by %c32_i32_3 dim 1 : vector<1x128xf32>, i32 -> vector<1x128xf32>
    %17 = arith.addf %15, %16 : vector<1x128xf32>
    %c64_i32_4 = arith.constant 64 : i32
    %18 = tpu.dynamic_rotate %15 by %c64_i32_4 dim 1 : vector<1x128xf32>, i32 -> vector<1x128xf32>
    %19 = arith.addf %17, %18 : vector<1x128xf32>
    %c96_i32_5 = arith.constant 96 : i32
    %20 = tpu.dynamic_rotate %15 by %c96_i32_5 dim 1 : vector<1x128xf32>, i32 -> vector<1x128xf32>
    %21 = arith.addf %19, %20 : vector<1x128xf32>
    %cst_6 = arith.constant 1.562500e-02 : f32
    %22 = vector.broadcast %cst_6 : f32 to vector<1x128xf32>
    %23 = arith.mulf %21, %22 : vector<1x128xf32>
    %cst_7 = arith.constant 0.000000e+00 : f32
    %24 = vector.broadcast %cst_7 : f32 to vector<1x128xf32>
    %25 = arith.maximumf %23, %24 : vector<1x128xf32>
    %c0_8 = arith.constant 0 : index
    %c0_9 = arith.constant 0 : index
    %26 = vector.load %arg2[%c0_8, %c0_9] : memref<1x128xf32, #tpu.memory_space<vmem>>, vector<1x128xf32>
    %cst_10 = arith.constant 9.99999974E-6 : f32
    %27 = vector.broadcast %cst_10 : f32 to vector<1x128xf32>
    %28 = arith.addf %25, %27 : vector<1x128xf32>
    %29 = math.rsqrt %28 : vector<1x128xf32>
    %30 = arith.mulf %26, %29 : vector<1x128xf32>
    %31 = vector.broadcast %30 : vector<1x128xf32> to vector<16x128xf32>
    %32 = arith.mulf %12, %31 : vector<16x128xf32>
    %c0_11 = arith.constant 0 : index
    %c0_12 = arith.constant 0 : index
    %33 = vector.load %arg3[%c0_11, %c0_12] : memref<1x128xf32, #tpu.memory_space<vmem>>, vector<1x128xf32>
    %34 = vector.broadcast %33 : vector<1x128xf32> to vector<16x128xf32>
    %35 = arith.addf %32, %34 : vector<16x128xf32>
    %c0_13 = arith.constant 0 : index
    %c0_14 = arith.constant 0 : index
    %36 = vector.load %arg4[%c0_13, %c0_14] : memref<16x128xf32, #tpu.memory_space<vmem>>, vector<16x128xf32>
    tpu.vector_store %arg4[%c0_13, %c0_14], %35 {strides = array<i32>} : memref<16x128xf32, #tpu.memory_space<vmem>>, vector<16x128xf32>,
    return
  }
  func.func @transform_0(%arg0: i32) -> (i32, i32) {
    %c0_i32 = arith.constant 0 : i32
    %c0_i32_0 = arith.constant 0 : i32
    %c0_i32_1 = arith.constant 0 : i32
    return %c0_i32, %c0_i32_0 : i32, i32
  }
  func.func @transform_1(%arg0: i32) -> (i32, i32) {
    %c0_i32 = arith.constant 0 : i32
    %c0_i32_0 = arith.constant 0 : i32
    %c0_i32_1 = arith.constant 0 : i32
    return %c0_i32, %c0_i32_0 : i32, i32
  }
  func.func @transform_2(%arg0: i32) -> (i32, i32) {
    %c0_i32 = arith.constant 0 : i32
    %c0_i32_0 = arith.constant 0 : i32
    %c0_i32_1 = arith.constant 0 : i32
    return %c0_i32, %c0_i32_0 : i32, i32
  }
  func.func @transform_3(%arg0: i32) -> (i32, i32) {
    %c0_i32 = arith.constant 0 : i32
    %c0_i32_0 = arith.constant 0 : i32
    %c0_i32_1 = arith.constant 0 : i32
    return %c0_i32, %c0_i32_0 : i32, i32
  }
}

</mosaic_0001>

<bundles_post_ra>
// kernel: tpu_custom_call.1
= control target key start
LH: loop header
LB: loop body
LE: loop exit
PB: predicated region body
PF: predicated region fallthrough
CT: control target
= control target key end

     0   :  { %8 = vsyncpa [#allocation3], 0  ;;  %s235_s0 = inlined_call_operand.hbm [shape: f32[16,128], index: 0, kind: input, shape index: {}]   ;;  %s236_s1 = inlined_call_operand.vmem [shape: f32[1,128], index: 1, kind: input, shape index: {}]   ;;  %s237_s2 = inlined_call_operand.vmem [shape: f32[1,128], index: 2, kind: input, shape index: {}]   ;;  %s238_s3 = inlined_call_operand.hbm [shape: f32[16,128], index: 3, kind: output, shape index: {}]  }
   0x1   :  { %9 = vsyncpa [#allocation4], 0  ;;  %s172_s12 = smov [#allocation2]   ;;  %s124_s16 = scalar_lea.hbm %s235_s0, 256 }
   0x2   :  { %s15_s13 = sshll.u32 %s172_s12, 4  ;;  %p125_p0 = scmp.ne.s32.totalorder %s235_s0, %s124_s16  ;;  %s16_s13 = int_to_ptr.vmem [resolvable:$true] %s15_s13 }
   0x3   :  { %p128_p1 = scmp.lt.u32.totalorder %s124_s16, %s235_s0 }
   0x5   :  { %p130_p2 = pnand %p128_p1, %p125_p0 }
   0x7   :  { %133 = shalt.err (!%p130_p2)
}
   0x8   :  { %s134_s21 = scalar_lea.vmem %s16_s13, 256  ;;  %p139_p4 = scmp.lt.s32.totalorder %s16_s13, %s16_s13 }
   0x9   :  { %p135_p3 = scmp.ne.s32.totalorder %s16_s13, %s134_s21  ;;  %p140_p5 = scmp.lt.s32.totalorder %s134_s21, %s134_s21 }
   0xb   :  { %p141_p6 = por %p140_p5, %p139_p4 }
   0xd   :  { %p142_p7 = pnand %p141_p6, %p135_p3 }
   0xf   :  { %145 = shalt.err (!%p142_p7)
}
  0x10   :  { %s173_s22 = smov 128   ;;  %s174_s23 = smov 8  }
  0x11   :  { %21 = dma.hbm_to_vmem [thread:$0]  %s235_s0, 256, %s16_s13, [#allocation3], %s173_s22, %s173_s22, %s174_s23  }
  0x12   :  { %168 = dma.done.wait [#allocation3], 256  }
  0x13   :  { %169 = vsyncadd [#allocation3], 4294967040  ;;  %v29_v0 = vld [vmem:[#allocation2] sm:$0xff]  ;;  %v30_v1 = vld [vmem:[#allocation2 + $0x8] sm:$0xff]  ;;  %s175_s26 = smov 32   ;;  %s176_s27 = smov 96   ;;  %v48_v9 = vlaneseq }
  0x14   :  { %v31_v2 = vadd.f32 %v30_v1, %v29_v0  ;;  %s177_s28 = smov 64   ;;  %v74_v40 = vld [vmem:[%s236_s1] sm:$0x1]  ;;  %s178_s5 = smov [#allocation5]  }
  0x15   :  { %v49_v12 = vshrl.u32 %v48_v9, 7  ;;  %v114_v44 = vld [vmem:[%s237_s2] ss:$0 sm:$0xff]  ;;  %s102_s6 = sshll.u32 %s178_s5, 4  ;;  %s103_s6 = int_to_ptr.vmem [resolvable:$true] %s102_s6 }
  0x16   :  { %v32_v3 = vrot.slane %v31_v2, 4  ;;  %s146_s7 = scalar_lea.vmem %s103_s6, 256  ;;  %p151_p9 = scmp.lt.s32.totalorder %s103_s6, %s103_s6 }
  0x17   :  { %v50_v16 = vsub.s32 0, %v49_v12  ;;  %p147_p8 = scmp.ne.s32.totalorder %s103_s6, %s146_s7  ;;  %p152_p10 = scmp.lt.s32.totalorder %s146_s7, %s146_s7 }
  0x18   :  { %v33_v4 = vadd.f32 %v32_v3, %v31_v2 }
  0x19   :  { %p153_p11 = por %p152_p10, %p151_p9 }
  0x1a   :  { %v34_v5 = vrot.slane %v33_v4, 2 }
  0x1b   :  { %p154_p12 = pnand %p153_p11, %p147_p8 }
  0x1c   :  { %v35_v6 = vadd.f32 %v34_v5, %v33_v4 }
  0x1e   :  { %v36_v7 = vrot.slane %v35_v6, 1 }
  0x20   :  { %v37_v8 = vadd.f32 %v36_v7, %v35_v6 }
  0x22   :  { %38 = vrot.lane.b32.xlu0 %v37_v8, %s175_s26  ;;  %44 = vrot.lane.b32.xlu1 %v37_v8, %s176_s27 }
  0x26   :  { %41 = vrot.lane.b32.xlu0 %v37_v8, %s177_s28 }
  0x94   :  { %v39_v10 = vpop.permute.xlu0 %38  ;;  %v45_v14 = vpop.permute.xlu1 %44 }
  0x95   :  { %v40_v11 = vadd.f32 %v39_v10, %v37_v8 }
  0x98   :  { %v42_v13 = vpop.permute.xlu0 %41 }
  0x99   :  { %v43_v15 = vadd.f32 %v42_v13, %v40_v11 }
  0x9b   :  { %v46_v17 = vadd.f32 %v45_v14, %v43_v15 }
  0x9d   :  { %v47_v18 = vmul.f32 0.015625, %v46_v17 }
  0x9f   :  { %v51_v19 = vrot.slane %v47_v18, %v50_v16 }
  0xa1   :  { %v52_v20 = vsub.f32 %v29_v0, %v51_v19  ;;  %v53_v21 = vsub.f32 %v30_v1, %v51_v19 }
  0xa3   :  { %v54_v22 = vmul.f32 %v52_v20, %v52_v20  ;;  %v55_v23 = vmul.f32 %v53_v21, %v53_v21 }
  0xa5   :  { %v56_v24 = vadd.f32 %v55_v23, %v54_v22 }
  0xa7   :  { %v57_v25 = vrot.slane %v56_v24, 4 }
  0xa9   :  { %v58_v26 = vadd.f32 %v57_v25, %v56_v24 }
  0xab   :  { %v59_v27 = vrot.slane %v58_v26, 2 }
  0xad   :  { %v60_v28 = vadd.f32 %v59_v27, %v58_v26 }
  0xaf   :  { %v61_v29 = vrot.slane %v60_v28, 1 }
  0xb1   :  { %v62_v30 = vadd.f32 %v61_v29, %v60_v28 }
  0xb3   :  { %66 = vrot.lane.b32.xlu0 %v62_v30, %s177_s28  ;;  %63 = vrot.lane.b32.xlu1 %v62_v30, %s175_s26 }
  0xb7   :  { %69 = vrot.lane.b32.xlu1 %v62_v30, %s176_s27 }
 0x125   :  { %v64_v31 = vpop.permute.xlu1 %63  ;;  %v67_v33 = vpop.permute.xlu0 %66 }
 0x126   :  { %v65_v32 = vadd.f32 %v64_v31, %v62_v30 }
 0x128   :  { %v68_v34 = vadd.f32 %v67_v33, %v65_v32 }
 0x129   :  { %v70_v35 = vpop.permute.xlu1 %69 }
 0x12a   :  { %v71_v36 = vadd.f32 %v70_v35, %v68_v34 }
 0x12c   :  { %v72_v37 = vmul.f32 0.015625, %v71_v36 }
 0x12e   :  { %v73_v38 = vmax.f32 %v72_v37, 0.0 }
 0x130   :  { %v75_v39 = vadd.f32 1e-05, %v73_v38 }
 0x132   :  { %122 = vrsqrt.f32 %v75_v39 }
 0x13c   :  { %v123_v41 = vpop.eup %122 }
 0x13d   :  { %v77_v42 = vmul.f32 %v123_v41, %v74_v40 }
 0x13f   :  { %v82_v43 = vrot.slane %v77_v42, %v50_v16 }
 0x141   :  { %v84_v45 = vmul.f32 %v82_v43, %v52_v20  ;;  %v85_v46 = vmul.f32 %v82_v43, %v53_v21 }
 0x143   :  { %v93_v47 = vadd.f32 %v114_v44, %v84_v45  ;;  %v94_v48 = vadd.f32 %v114_v44, %v85_v46 }
 0x145   :  { %95 = vst [vmem:[#allocation5] sm:$0xff] %v93_v47  ;;  %96 = vst [vmem:[#allocation5 + $0x8] sm:$0xff] %v94_v48 }
 0x146   :  { %157 = shalt.err (!%p154_p12)
}
 0x147   :  { %s158_s2 = scalar_lea.hbm %s238_s3, 256 }
 0x148   :  { %p159_p13 = scmp.ne.s32.totalorder %s238_s3, %s158_s2  ;;  %p162_p0 = scmp.lt.u32.totalorder %s158_s2, %s238_s3 }
 0x14a   :  { %p164_p1 = pnand %p162_p0, %p159_p13 }
 0x14c   :  { %167 = shalt.err (!%p164_p1)
}
 0x14d   :  { %108 = dma.vmem_to_hbm [thread:$0]  %s103_s6, 256, %s238_s3, [#allocation4], %s173_s22, %s173_s22, %s174_s23  }
 0x14e   :  { %170 = dma.done.wait [#allocation4], 256  }
 0x14f   :  { %171 = vsyncadd [#allocation4], 4294967040 }
 0x150   :  { %112 = vsyncpa [#allocation3], 1 }
 0x151   :  { %113 = vsyncpa [#allocation4], 1 }

</bundles_post_ra>
